<compile_context>
chip_gen: v5e
topology: v5e:2x2
jax: 0.10.0
libtpu: 0.0.40
codegen_flags: <defaults>
</compile_context>

<pallas_src>
import functools

import jax
import jax.numpy as jnp
from jax.experimental import pallas as pl
from jax.experimental.pallas import tpu as pltpu


def _round_up(x, m):
    return ((x + m - 1) // m) * m


def _mlp_kernel(x_ref, w1_ref, b1_ref, w2_ref, b2_ref, w3_ref, b3_ref,
                out_ref, acc_ref):
    # Grid: (batch tiles, K tiles of the first matmul).
    k = pl.program_id(1)

    @pl.when(k == 0)
    def _():
        acc_ref[...] = jnp.zeros_like(acc_ref)

    # Layer 1 partial product for this K slice (bf16 inputs, f32 accumulation).
    acc_ref[...] += jnp.dot(x_ref[...], w1_ref[...],
                            preferred_element_type=jnp.float32)

    @pl.when(k == pl.num_programs(1) - 1)
    def _():
        # Finish layer 1: bias + ReLU in f32.
        h1 = jnp.maximum(acc_ref[...] + b1_ref[...], 0.0)
        # Layer 2: bf16 matmul inputs, f32 accumulate / elementwise.
        h2 = jnp.dot(h1.astype(w2_ref.dtype), w2_ref[...],
                     preferred_element_type=jnp.float32) + b2_ref[...]
        h2 = jnp.maximum(h2, 0.0)
        # Layer 3 (lane-padded output width).
        o = jnp.dot(h2.astype(w3_ref.dtype), w3_ref[...],
                    preferred_element_type=jnp.float32) + b3_ref[...]
        out_ref[...] = o.astype(out_ref.dtype)


def unreg_nn_forward(x, params, *, tile_b=128, tile_k=512):
    """Forward pass of unRegNN. x is [B, C, H, W]; flatten done in glue."""
    w1, b1, w2, b2, w3, b3 = params
    B = x.shape[0]
    D = w1.shape[0]
    hidden = w1.shape[1]            # 256
    num_classes = w3.shape[1]

    x2d = x.reshape(B, -1).astype(jnp.float32)
    assert x2d.shape[1] == D

    # Tile sizing: 128-row batch tiles for MXU occupancy; shrink (multiple of 8)
    # when the actual batch is tiny so the small example doesn't pad 2 -> 128.
    TILE_B = min(tile_b, _round_up(B, 8))
    B_pad = _round_up(B, TILE_B)
    TILE_K = min(tile_k, _round_up(D, 128))
    D_pad = _round_up(D, TILE_K)
    C_pad = _round_up(max(num_classes, 1), 128)   # lane-dense output width

    # Zero-pad + cast matmul operands to bf16; biases stay f32.
    xp = jnp.zeros((B_pad, D_pad), jnp.bfloat16).at[:B, :D].set(
        x2d.astype(jnp.bfloat16))
    w1p = jnp.zeros((D_pad, hidden), jnp.bfloat16).at[:D, :].set(
        w1.astype(jnp.bfloat16))
    w2b = w2.astype(jnp.bfloat16)
    w3p = jnp.zeros((hidden, C_pad), jnp.bfloat16).at[:, :num_classes].set(
        w3.astype(jnp.bfloat16))
    b1r = b1.reshape(1, hidden).astype(jnp.float32)
    b2r = b2.reshape(1, hidden).astype(jnp.float32)
    b3p = jnp.zeros((1, C_pad), jnp.float32).at[:, :num_classes].set(
        b3.reshape(1, -1).astype(jnp.float32))

    nb = B_pad // TILE_B
    nk = D_pad // TILE_K

    # VMEM budget: double-buffered x/W1 tiles + resident W2/W3/biases + out tile + acc.
    bf16, f32 = 2, 4
    vmem_need = (2 * TILE_B * TILE_K * bf16 +          # x tiles
                 2 * TILE_K * hidden * bf16 +          # w1 tiles
                 2 * hidden * hidden * bf16 +          # w2
                 2 * hidden * C_pad * bf16 +           # w3 (padded)
                 2 * (2 * hidden + C_pad) * f32 +      # biases
                 2 * TILE_B * C_pad * f32 +            # out tile
                 TILE_B * hidden * f32)                # accumulator scratch
    vmem_limit = int(min(max(2 * vmem_need + (2 << 20), 8 << 20), 64 << 20))

    cost = pl.CostEstimate(
        flops=2 * B_pad * (D_pad * hidden + hidden * hidden + hidden * C_pad),
        transcendentals=0,
        bytes_accessed=(xp.size * bf16 + w1p.size * bf16 + w2b.size * bf16 +
                        w3p.size * bf16 + (b1r.size + b2r.size + b3p.size) * f32 +
                        B_pad * C_pad * f32),
    )

    grid_spec = pltpu.PrefetchScalarGridSpec(
        num_scalar_prefetch=0,
        grid=(nb, nk),
        in_specs=[
            pl.BlockSpec((TILE_B, TILE_K), lambda i, k: (i, k)),   # x
            pl.BlockSpec((TILE_K, hidden), lambda i, k: (k, 0)),   # w1 (K-tiled)
            pl.BlockSpec((1, hidden),      lambda i, k: (0, 0)),   # b1 (resident)
            pl.BlockSpec((hidden, hidden), lambda i, k: (0, 0)),   # w2 (resident)
            pl.BlockSpec((1, hidden),      lambda i, k: (0, 0)),   # b2 (resident)
            pl.BlockSpec((hidden, C_pad),  lambda i, k: (0, 0)),   # w3 (resident, padded)
            pl.BlockSpec((1, C_pad),       lambda i, k: (0, 0)),   # b3 (resident, padded)
        ],
        out_specs=pl.BlockSpec((TILE_B, C_pad), lambda i, k: (i, 0)),
        scratch_shapes=[pltpu.VMEM((TILE_B, hidden), jnp.float32)],
    )

    out_padded = pl.pallas_call(
        _mlp_kernel,
        out_shape=jax.ShapeDtypeStruct((B_pad, C_pad), jnp.float32),
        grid_spec=grid_spec,
        compiler_params=pltpu.CompilerParams(
            dimension_semantics=("parallel", "arbitrary"),
            vmem_limit_bytes=vmem_limit,
        ),
        cost_estimate=cost,
    )(xp, w1p, b1r, w2b, b2r, w3p, b3p)

    # Strip batch padding and lane padding back to the logical shape.
    return out_padded[:B, :num_classes]


def init_params(key, input_size, num_classes):
    """nn.Linear-style init (uniform(-1/sqrt(fan_in), 1/sqrt(fan_in))).
    Weights stored transposed relative to PyTorch ([in, out]) so the kernel does x @ W."""
    def linear(k, fan_in, fan_out):
        kw, kb = jax.random.split(k)
        bound = 1.0 / jnp.sqrt(fan_in)
        w = jax.random.uniform(kw, (fan_in, fan_out), jnp.float32, -bound, bound)
        b = jax.random.uniform(kb, (fan_out,), jnp.float32, -bound, bound)
        return w, b

    k1, k2, k3 = jax.random.split(key, 3)
    w1, b1 = linear(k1, input_size, 256)
    w2, b2 = linear(k2, 256, 256)
    w3, b3 = linear(k3, 256, num_classes)
    return (w1, b1, w2, b2, w3, b3)


if __name__ == "__main__":
    key = jax.random.PRNGKey(0)
    k_x, k_p = jax.random.split(key)

    # Small example consistent with the module: x is [B, C, H, W], flattened inside forward.
    B, C, H, W = 2, 4, 16, 16
    input_size = C * H * W          # 1024
    num_classes = 10

    x = jax.random.normal(k_x, (B, C, H, W), dtype=jnp.float32)
    params = init_params(k_p, input_size, num_classes)

    fwd = jax.jit(functools.partial(unreg_nn_forward))
    out = fwd(x, params)
    jax.block_until_ready(out)

    # Pure-JAX f32 reference of the same forward pass (kernel uses bf16 matmul inputs
    # with f32 accumulation, so tolerance is relaxed accordingly).
    w1, b1, w2, b2, w3, b3 = params
    xr = x.reshape(B, -1)
    ref = jnp.maximum(xr @ w1 + b1, 0.0)
    ref = jnp.maximum(ref @ w2 + b2, 0.0)
    ref = ref @ w3 + b3

    assert out.shape == (B, num_classes)
    assert jnp.allclose(out, ref, atol=5e-2, rtol=5e-2), (
        f"max abs err {jnp.max(jnp.abs(out - ref))}")

    print("KERNEL_OK")
</pallas_src>

<mosaic_0001>
module attributes {stable_mosaic.version = 11 : i64} {
  func.func @_mlp_kernel(%arg0: i32, %arg1: i32, %arg2: memref<8x512xbf16, #tpu.memory_space<vmem>>, %arg3: memref<512x256xbf16, #tpu.memory_space<vmem>>, %arg4: memref<1x256xf32, #tpu.memory_space<vmem>>, %arg5: memref<256x256xbf16, #tpu.memory_space<vmem>>, %arg6: memref<1x256xf32, #tpu.memory_space<vmem>>, %arg7: memref<256x128xbf16, #tpu.memory_space<vmem>>, %arg8: memref<1x128xf32, #tpu.memory_space<vmem>>, %arg9: memref<8x128xf32, #tpu.memory_space<vmem>>, %arg10: memref<8x256xf32, #tpu.memory_space<vmem>>) attributes {dimension_semantics = [#tpu.dimension_semantics<parallel>, #tpu.dimension_semantics<arbitrary>], iteration_bounds = array<i64: 1, 2>, scalar_prefetch = 0 : i64, scratch_operands = 1 : i64, tpu.core_type = #tpu.core_type<tc>, window_params = [{transform_indices = @transform_0, window_bounds = array<i64: 8, 512>}, {transform_indices = @transform_1, window_bounds = array<i64: 512, 256>}, {pipeline_mode = #tpu.pipeline_mode<synchronous>, transform_indices = @transform_2, window_bounds = array<i64: 1, 256>}, {pipeline_mode = #tpu.pipeline_mode<synchronous>, transform_indices = @transform_3, window_bounds = array<i64: 256, 256>}, {pipeline_mode = #tpu.pipeline_mode<synchronous>, transform_indices = @transform_4, window_bounds = array<i64: 1, 256>}, {pipeline_mode = #tpu.pipeline_mode<synchronous>, transform_indices = @transform_5, window_bounds = array<i64: 256, 128>}, {pipeline_mode = #tpu.pipeline_mode<synchronous>, transform_indices = @transform_6, window_bounds = array<i64: 1, 128>}, {transform_indices = @transform_7, window_bounds = array<i64: 8, 128>}]} {
    %c0_i32 = arith.constant 0 : i32
    %0 = arith.cmpi eq, %arg1, %c0_i32 : i32
    %1 = arith.extui %0 : i1 to i32
    %c0_i32_0 = arith.constant 0 : i32
    %2 = arith.cmpi ne, %1, %c0_i32_0 : i32
    scf.if %2 {
      %cst_9 = arith.constant 0.000000e+00 : f32
      %12 = vector.broadcast %cst_9 : f32 to vector<8x256xf32>
      %c0_10 = arith.constant 0 : index
      %c0_11 = arith.constant 0 : index
      %13 = vector.load %arg10[%c0_10, %c0_11] : memref<8x256xf32, #tpu.memory_space<vmem>>, vector<8x256xf32>
      tpu.vector_store %arg10[%c0_10, %c0_11], %12 {strides = array<i32>} : memref<8x256xf32, #tpu.memory_space<vmem>>, vector<8x256xf32>,
    } else {
    }
    %c0 = arith.constant 0 : index
    %c0_1 = arith.constant 0 : index
    %3 = vector.load %arg10[%c0, %c0_1] : memref<8x256xf32, #tpu.memory_space<vmem>>, vector<8x256xf32>
    %c0_2 = arith.constant 0 : index
    %c0_3 = arith.constant 0 : index
    %4 = vector.load %arg2[%c0_2, %c0_3] : memref<8x512xbf16, #tpu.memory_space<vmem>>, vector<8x512xbf16>
    %c0_4 = arith.constant 0 : index
    %c0_5 = arith.constant 0 : index
    %5 = vector.load %arg3[%c0_4, %c0_5] : memref<512x256xbf16, #tpu.memory_space<vmem>>, vector<512x256xbf16>
    %cst = arith.constant dense<0.000000e+00> : vector<8x256xf32>
    %6 = tpu.matmul %4, %5, %cst {dimension_numbers = #tpu.dot_dimension_numbers<[1], [0], [0], [1], [0, 0, 1, 1], [], []>} : vector<8x512xbf16>, vector<512x256xbf16>, vector<8x256xf32> -> vector<8x256xf32>
    %7 = arith.addf %3, %6 : vector<8x256xf32>
    %c0_6 = arith.constant 0 : index
    %c0_7 = arith.constant 0 : index
    %8 = vector.load %arg10[%c0_6, %c0_7] : memref<8x256xf32, #tpu.memory_space<vmem>>, vector<8x256xf32>
    tpu.vector_store %arg10[%c0_6, %c0_7], %7 {strides = array<i32>} : memref<8x256xf32, #tpu.memory_space<vmem>>, vector<8x256xf32>,
    %c1_i32 = arith.constant 1 : i32
    %9 = arith.cmpi eq, %arg1, %c1_i32 : i32
    %10 = arith.extui %9 : i1 to i32
    %c0_i32_8 = arith.constant 0 : i32
    %11 = arith.cmpi ne, %10, %c0_i32_8 : i32
    scf.if %11 {
      %c0_9 = arith.constant 0 : index
      %c0_10 = arith.constant 0 : index
      %12 = vector.load %arg10[%c0_9, %c0_10] : memref<8x256xf32, #tpu.memory_space<vmem>>, vector<8x256xf32>
      %c0_11 = arith.constant 0 : index
      %c0_12 = arith.constant 0 : index
      %13 = vector.load %arg4[%c0_11, %c0_12] : memref<1x256xf32, #tpu.memory_space<vmem>>, vector<1x256xf32>
      %14 = vector.broadcast %13 : vector<1x256xf32> to vector<8x256xf32>
      %15 = arith.addf %12, %14 : vector<8x256xf32>
      %cst_13 = arith.constant 0.000000e+00 : f32
      %16 = vector.broadcast %cst_13 : f32 to vector<8x256xf32>
      %17 = arith.maximumf %15, %16 : vector<8x256xf32>
      %18 = arith.truncf %17 : vector<8x256xf32> to vector<8x256xbf16>
      %c0_14 = arith.constant 0 : index
      %c0_15 = arith.constant 0 : index
      %19 = vector.load %arg5[%c0_14, %c0_15] : memref<256x256xbf16, #tpu.memory_space<vmem>>, vector<256x256xbf16>
      %cst_16 = arith.constant dense<0.000000e+00> : vector<8x256xf32>
      %20 = tpu.matmul %18, %19, %cst_16 {dimension_numbers = #tpu.dot_dimension_numbers<[1], [0], [0], [1], [0, 0, 1, 1], [], []>} : vector<8x256xbf16>, vector<256x256xbf16>, vector<8x256xf32> -> vector<8x256xf32>
      %c0_17 = arith.constant 0 : index
      %c0_18 = arith.constant 0 : index
      %21 = vector.load %arg6[%c0_17, %c0_18] : memref<1x256xf32, #tpu.memory_space<vmem>>, vector<1x256xf32>
      %22 = vector.broadcast %21 : vector<1x256xf32> to vector<8x256xf32>
      %23 = arith.addf %20, %22 : vector<8x256xf32>
      %cst_19 = arith.constant 0.000000e+00 : f32
      %24 = vector.broadcast %cst_19 : f32 to vector<8x256xf32>
      %25 = arith.maximumf %23, %24 : vector<8x256xf32>
      %26 = arith.truncf %25 : vector<8x256xf32> to vector<8x256xbf16>
      %c0_20 = arith.constant 0 : index
      %c0_21 = arith.constant 0 : index
      %27 = vector.load %arg7[%c0_20, %c0_21] : memref<256x128xbf16, #tpu.memory_space<vmem>>, vector<256x128xbf16>
      %cst_22 = arith.constant dense<0.000000e+00> : vector<8x128xf32>
      %28 = tpu.matmul %26, %27, %cst_22 {dimension_numbers = #tpu.dot_dimension_numbers<[1], [0], [0], [1], [0, 0, 1, 1], [], []>} : vector<8x256xbf16>, vector<256x128xbf16>, vector<8x128xf32> -> vector<8x128xf32>
      %c0_23 = arith.constant 0 : index
      %c0_24 = arith.constant 0 : index
      %29 = vector.load %arg8[%c0_23, %c0_24] : memref<1x128xf32, #tpu.memory_space<vmem>>, vector<1x128xf32>
      %30 = vector.broadcast %29 : vector<1x128xf32> to vector<8x128xf32>
      %31 = arith.addf %28, %30 : vector<8x128xf32>
      %c0_25 = arith.constant 0 : index
      %c0_26 = arith.constant 0 : index
      %32 = vector.load %arg9[%c0_25, %c0_26] : memref<8x128xf32, #tpu.memory_space<vmem>>, vector<8x128xf32>
      tpu.vector_store %arg9[%c0_25, %c0_26], %31 {strides = array<i32>} : memref<8x128xf32, #tpu.memory_space<vmem>>, vector<8x128xf32>,
    } else {
    }
    return
  }
  func.func @transform_0(%arg0: i32, %arg1: i32) -> (i32, i32) {
    %c0_i32 = arith.constant 0 : i32
    return %arg0, %arg1 : i32, i32
  }
  func.func @transform_1(%arg0: i32, %arg1: i32) -> (i32, i32) {
    %c0_i32 = arith.constant 0 : i32
    %c0_i32_0 = arith.constant 0 : i32
    return %arg1, %c0_i32 : i32, i32
  }
  func.func @transform_2(%arg0: i32, %arg1: i32) -> (i32, i32) {
    %c0_i32 = arith.constant 0 : i32
    %c0_i32_0 = arith.constant 0 : i32
    %c0_i32_1 = arith.constant 0 : i32
    return %c0_i32, %c0_i32_0 : i32, i32
  }
  func.func @transform_3(%arg0: i32, %arg1: i32) -> (i32, i32) {
    %c0_i32 = arith.constant 0 : i32
    %c0_i32_0 = arith.constant 0 : i32
    %c0_i32_1 = arith.constant 0 : i32
    return %c0_i32, %c0_i32_0 : i32, i32
  }
  func.func @transform_4(%arg0: i32, %arg1: i32) -> (i32, i32) {
    %c0_i32 = arith.constant 0 : i32
    %c0_i32_0 = arith.constant 0 : i32
    %c0_i32_1 = arith.constant 0 : i32
    return %c0_i32, %c0_i32_0 : i32, i32
  }
  func.func @transform_5(%arg0: i32, %arg1: i32) -> (i32, i32) {
    %c0_i32 = arith.constant 0 : i32
    %c0_i32_0 = arith.constant 0 : i32
    %c0_i32_1 = arith.constant 0 : i32
    return %c0_i32, %c0_i32_0 : i32, i32
  }
  func.func @transform_6(%arg0: i32, %arg1: i32) -> (i32, i32) {
    %c0_i32 = arith.constant 0 : i32
    %c0_i32_0 = arith.constant 0 : i32
    %c0_i32_1 = arith.constant 0 : i32
    return %c0_i32, %c0_i32_0 : i32, i32
  }
  func.func @transform_7(%arg0: i32, %arg1: i32) -> (i32, i32) {
    %c0_i32 = arith.constant 0 : i32
    %c0_i32_0 = arith.constant 0 : i32
    return %arg0, %c0_i32 : i32, i32
  }
}

</mosaic_0001>

<bundles_post_ra>
// kernel: unreg_nn_forward.1
= control target key start
LH: loop header
LB: loop body
LE: loop exit
PB: predicated region body
PF: predicated region fallthrough
CT: control target
= control target key end

     0   :  { %s2020_s24 = smov 0   ;;  %s2022_s25 = smov 0   ;;  %s2461_s0 = inlined_call_operand.vmem [shape: bf16[8,1024], index: 0, kind: input, shape index: {}]   ;;  %s2462_s1 = inlined_call_operand.vmem [shape: bf16[1024,256], index: 1, kind: input, shape index: {}]   ;;  %s2463_s2 = inlined_call_operand.vmem [shape: f32[1,256], index: 2, kind: input, shape index: {}]   ;;  %s2464_s3 = inlined_call_operand.vmem [shape: bf16[256,256], index: 3, kind: input, shape index: {}]   ;;  %s2465_s4 = inlined_call_operand.vmem [shape: f32[1,256], index: 4, kind: input, shape index: {}]   ;;  %s2466_s5 = inlined_call_operand.vmem [shape: bf16[256,128], index: 5, kind: input, shape index: {}]   ;;  %s2467_s6 = inlined_call_operand.vmem [shape: f32[1,128], index: 6, kind: input, shape index: {}]   ;;  %s2468_s7 = inlined_call_operand.vmem [shape: f32[8,128], index: 7, kind: output, shape index: {}]  }
   0x1   :  { %s2024_s26 = smov 0  }
   0x2 LB: > { %s26_s27 = sadd.s32 1, %s1973_s25  ;;  %p1357_p0 = scmp.ge.s32.totalorder %s1977_s26, 1  ;;  %s1977_s26 = sphi %s2024_s26, %s17_s26   ;;  %s1973_s25 = sphi %s2022_s25, %s2470_s25   ;;  %s1969_s24 = sphi %s2020_s24, %s2469_s24  }
   0x3   : > { %p27_p1 = scmp.ge.s32.totalorder %s26_s27, 2  ;;  %p268_p2 = scmp.lt.s32.totalorder %s1977_s26, 3 }
   0x5   : > { %s2472_s27 = smov (%p27_p1, %s26_s27), 0  ;;  %p269_p3 = pnand %p1357_p0, %p268_p2 }
   0x6   : > { %s1358_s28 = sshll.u32 (!%p269_p3), %s1969_s24, 2  ;;  %s1360_s29 = sshll.u32 (!%p269_p3), %s1969_s24, 6 }
   0x7   : > { %272 = sbr.rel (%p269_p3) target bundleno = 542 (0x21e), region = 48  ;;  %p312_p4 = scmp.lt.s32.totalorder (!%p269_p3), %s1358_s28, 7 }
   0x8   : > { %p320_p5 = scmp.lt.s32.totalorder (!%p269_p3), %s1360_s29, 127  ;;  %p1363_p6 = scmp.ne.s32.totalorder (!%p269_p3), %s1969_s24, 0 }
   0xc   : > { %s2474_s28 = smov (!%p312_p4, %s1358_s28), 7  ;;  %s2476_s29 = smov (!%p320_p5, %s1360_s29), 127 }
   0xd   : > { %s1359_s30 = sshll.u32 %s2474_s28, 2  ;;  %s1816_s11 = sshll.u32 %s2476_s29, 3 }
   0xe   : > { %s2045_s10 = scalar_lea.vmem %s2461_s0, %s1359_s30  ;;  %s2050_s14 = scalar_lea.vmem %s2462_s1, %s1816_s11 }
   0xf   : > { %333 = sbr.rel (%p1363_p6) target bundleno = 23 (0x17), region = 52 }
  0x14   : > { %v1979_v0 = vmov 0.0  }
  0x15   : > { %334 = vst [vmem:[#allocation2] sm:$0xff] %v1979_v0 }
  0x16   : > { %335 = vst [vmem:[#allocation2 + $0x8] sm:$0xff] %v1979_v0 }
  0x17 PF: > { %v1422_v1 = vld [vmem:[%s2050_s14 + $0x70] sm:$0xf]  ;;  %v1832_v2 = vld [vmem:[%s2050_s14 + $0x74] sm:$0xf0]  ;;  %v1414_v12 = vld [vmem:[%s2050_s14 + $0x60] sm:$0xf] }
  0x18   : > { %v1486_v3 = vld [vmem:[%s2050_s14 + $0xf0] sm:$0xf]  ;;  %v1423_v4 = vor.u32 %v1832_v2, %v1422_v1  ;;  %v1848_v5 = vld [vmem:[%s2050_s14 + $0xf4] sm:$0xf0]  ;;  %v1830_v14 = vld [vmem:[%s2050_s14 + $0x64] sm:$0xf0] }
  0x19   : > { %v1550_v6 = vld [vmem:[%s2050_s14 + $0x170] sm:$0xf]  ;;  %v1864_v7 = vld [vmem:[%s2050_s14 + $0x174] sm:$0xf0]  ;;  %v1487_v8 = vor.u32 %v1848_v5, %v1486_v3  ;;  %v1478_v15 = vld [vmem:[%s2050_s14 + $0xe0] sm:$0xf]  ;;  %v1415_v17 = vor.u32 %v1830_v14, %v1414_v12 }
  0x1a   : > { %v1551_v9 = vor.u32 %v1864_v7, %v1550_v6  ;;  %v1614_v10 = vld [vmem:[%s2050_s14 + $0x1f0] sm:$0xf]  ;;  %v1880_v11 = vld [vmem:[%s2050_s14 + $0x1f4] sm:$0xf0]  ;;  %738 = vmatpush.bf16.msra.mxu0 %v1423_v4  ;;  %v1846_v16 = vld [vmem:[%s2050_s14 + $0xe4] sm:$0xf0] }
  0x1b   : > { %v1615_v13 = vor.u32 %v1880_v11, %v1614_v10  ;;  %751 = vmatpush.bf16.msra.mxu1 %v1487_v8  ;;  %v1479_v18 = vor.u32 %v1846_v16, %v1478_v15  ;;  %v1542_v19 = vld [vmem:[%s2050_s14 + $0x160] sm:$0xf]  ;;  %v1862_v20 = vld [vmem:[%s2050_s14 + $0x164] sm:$0xf0]  ;;  %v1406_v24 = vld [vmem:[%s2050_s14 + $0x50] sm:$0xf] }
  0x1c   : > { %764 = vmatpush.bf16.msra.mxu2 %v1551_v9  ;;  %v1606_v21 = vld [vmem:[%s2050_s14 + $0x1e0] sm:$0xf]  ;;  %v1543_v22 = vor.u32 %v1862_v20, %v1542_v19  ;;  %v1878_v23 = vld [vmem:[%s2050_s14 + $0x1e4] sm:$0xf0]  ;;  %v1828_v25 = vld [vmem:[%s2050_s14 + $0x54] sm:$0xf0] }
  0x1d   : > { %777 = vmatpush.bf16.msra.mxu3 %v1615_v13  ;;  %v1607_v26 = vor.u32 %v1878_v23, %v1606_v21  ;;  %v1470_v27 = vld [vmem:[%s2050_s14 + $0xd0] sm:$0xf]  ;;  %v1844_v28 = vld [vmem:[%s2050_s14 + $0xd4] sm:$0xf0]  ;;  %v1407_v30 = vor.u32 %v1828_v25, %v1406_v24  ;;  %v1398_v36 = vld [vmem:[%s2050_s14 + $0x40] sm:$0xf] }
  0x1e   : > { %v1534_v29 = vld [vmem:[%s2050_s14 + $0x150] sm:$0xf]  ;;  %739 = vmatpush.bf16.msra.mxu0 %v1415_v17  ;;  %v1860_v31 = vld [vmem:[%s2050_s14 + $0x154] sm:$0xf0]  ;;  %v1471_v34 = vor.u32 %v1844_v28, %v1470_v27  ;;  %v1826_v37 = vld [vmem:[%s2050_s14 + $0x44] sm:$0xf0] }
  0x1f   : > { %v1598_v32 = vld [vmem:[%s2050_s14 + $0x1d0] sm:$0xf]  ;;  %v1876_v33 = vld [vmem:[%s2050_s14 + $0x1d4] sm:$0xf0]  ;;  %752 = vmatpush.bf16.msra.mxu1 %v1479_v18  ;;  %v1535_v35 = vor.u32 %v1860_v31, %v1534_v29  ;;  %v1462_v38 = vld [vmem:[%s2050_s14 + $0xc0] sm:$0xf]  ;;  %v1399_v45 = vor.u32 %v1826_v37, %v1398_v36 }
  0x20   : > { %765 = vmatpush.bf16.msra.mxu2 %v1543_v22  ;;  %v1599_v39 = vor.u32 %v1876_v33, %v1598_v32  ;;  %v1842_v40 = vld [vmem:[%s2050_s14 + $0xc4] sm:$0xf0]  ;;  %v1526_v41 = vld [vmem:[%s2050_s14 + $0x140] sm:$0xf]  ;;  %v1390_v48 = vld [vmem:[%s2050_s14 + $0x30] sm:$0xf] }
  0x21   : > { %778 = vmatpush.bf16.msra.mxu3 %v1607_v26  ;;  %v1858_v42 = vld [vmem:[%s2050_s14 + $0x144] sm:$0xf0]  ;;  %v1590_v43 = vld [vmem:[%s2050_s14 + $0x1c0] sm:$0xf]  ;;  %v1463_v46 = vor.u32 %v1842_v40, %v1462_v38  ;;  %v1824_v49 = vld [vmem:[%s2050_s14 + $0x34] sm:$0xf0] }
  0x22   : > { %v1874_v44 = vld [vmem:[%s2050_s14 + $0x1c4] sm:$0xf0]  ;;  %740 = vmatpush.bf16.msra.mxu0 %v1407_v30  ;;  %v1527_v47 = vor.u32 %v1858_v42, %v1526_v41  ;;  %v1454_v50 = vld [vmem:[%s2050_s14 + $0xb0] sm:$0xf]  ;;  %v1840_v52 = vld [vmem:[%s2050_s14 + $0xb4] sm:$0xf0]  ;;  %v1391_v57 = vor.u32 %v1824_v49, %v1390_v48 }
  0x23   : > { %753 = vmatpush.bf16.msra.mxu1 %v1471_v34  ;;  %v1591_v51 = vor.u32 %v1874_v44, %v1590_v43  ;;  %v1518_v53 = vld [vmem:[%s2050_s14 + $0x130] sm:$0xf]  ;;  %v1856_v54 = vld [vmem:[%s2050_s14 + $0x134] sm:$0xf0]  ;;  %v1455_v58 = vor.u32 %v1840_v52, %v1454_v50  ;;  %v1382_v60 = vld [vmem:[%s2050_s14 + $0x20] sm:$0xf] }
  0x24   : > { %766 = vmatpush.bf16.msra.mxu2 %v1535_v35  ;;  %v1582_v55 = vld [vmem:[%s2050_s14 + $0x1b0] sm:$0xf]  ;;  %v1872_v56 = vld [vmem:[%s2050_s14 + $0x1b4] sm:$0xf0]  ;;  %v1519_v59 = vor.u32 %v1856_v54, %v1518_v53  ;;  %v1822_v61 = vld [vmem:[%s2050_s14 + $0x24] sm:$0xf0] }
  0x25   : > { %779 = vmatpush.bf16.msra.mxu3 %v1599_v39  ;;  %v1446_v62 = vld [vmem:[%s2050_s14 + $0xa0] sm:$0xf]  ;;  %v1583_v63 = vor.u32 %v1872_v56, %v1582_v55  ;;  %v1838_v0 = vld [vmem:[%s2050_s14 + $0xa4] sm:$0xf0]  ;;  %v1383_v5 = vor.u32 %v1822_v61, %v1382_v60  ;;  %v1374_v8 = vld [vmem:[%s2050_s14 + $0x10] sm:$0xf] }
  0x26   : > { %741 = vmatpush.bf16.msra.mxu0 %v1399_v45  ;;  %v1510_v1 = vld [vmem:[%s2050_s14 + $0x120] sm:$0xf]  ;;  %v1854_v2 = vld [vmem:[%s2050_s14 + $0x124] sm:$0xf0]  ;;  %v1447_v6 = vor.u32 %v1838_v0, %v1446_v62  ;;  %v1820_v9 = vld [vmem:[%s2050_s14 + $0x14] sm:$0xf0] }
  0x27   : > { %754 = vmatpush.bf16.msra.mxu1 %v1463_v46  ;;  %v1574_v3 = vld [vmem:[%s2050_s14 + $0x1a0] sm:$0xf]  ;;  %v1870_v4 = vld [vmem:[%s2050_s14 + $0x1a4] sm:$0xf0]  ;;  %v1511_v7 = vor.u32 %v1854_v2, %v1510_v1  ;;  %v1438_v10 = vld [vmem:[%s2050_s14 + $0x90] sm:$0xf]  ;;  %v1375_v17 = vor.u32 %v1820_v9, %v1374_v8 }
  0x28   : > { %767 = vmatpush.bf16.msra.mxu2 %v1527_v47  ;;  %v1575_v11 = vor.u32 %v1870_v4, %v1574_v3  ;;  %v1836_v12 = vld [vmem:[%s2050_s14 + $0x94] sm:$0xf0]  ;;  %v1502_v13 = vld [vmem:[%s2050_s14 + $0x110] sm:$0xf]  ;;  %v1366_v18 = vld [vmem:[%s2050_s14] sm:$0xf] }
  0x29   : > { %780 = vmatpush.bf16.msra.mxu3 %v1591_v51  ;;  %v1852_v14 = vld [vmem:[%s2050_s14 + $0x114] sm:$0xf0]  ;;  %v1566_v15 = vld [vmem:[%s2050_s14 + $0x190] sm:$0xf]  ;;  %v1818_v19 = vld [vmem:[%s2050_s14 + $0x4] sm:$0xf0]  ;;  %v1439_v21 = vor.u32 %v1836_v12, %v1438_v10 }
  0x2a   : > { %742 = vmatpush.bf16.msra.mxu0 %v1391_v57  ;;  %v1868_v16 = vld [vmem:[%s2050_s14 + $0x194] sm:$0xf0]  ;;  %v1430_v20 = vld [vmem:[%s2050_s14 + $0x80] sm:$0xf]  ;;  %v1503_v22 = vor.u32 %v1852_v14, %v1502_v13  ;;  %v1834_v23 = vld [vmem:[%s2050_s14 + $0x84] sm:$0xf0]  ;;  %v1367_v33 = vor.u32 %v1818_v19, %v1366_v18 }
  0x2b   : > { %755 = vmatpush.bf16.msra.mxu1 %v1455_v58  ;;  %v1494_v24 = vld [vmem:[%s2050_s14 + $0x100] sm:$0xf]  ;;  %v1850_v25 = vld [vmem:[%s2050_s14 + $0x104] sm:$0xf0]  ;;  %v1567_v26 = vor.u32 %v1868_v16, %v1566_v15  ;;  %v1831_v29 = vld [vmem:[%s2050_s14 + $0x74] sm:$0xf]  ;;  %v1431_v38 = vor.u32 %v1834_v23, %v1430_v20 }
  0x2c   : > { %768 = vmatpush.bf16.msra.mxu2 %v1519_v59  ;;  %v1558_v27 = vld [vmem:[%s2050_s14 + $0x180] sm:$0xf]  ;;  %v1866_v28 = vld [vmem:[%s2050_s14 + $0x184] sm:$0xf0]  ;;  %v1424_v30 = vld [vmem:[%s2050_s14 + $0x78] sm:$0xf0]  ;;  %v1495_v39 = vor.u32 %v1850_v25, %v1494_v24 }
  0x2d   : > { %781 = vmatpush.bf16.msra.mxu3 %v1583_v63  ;;  %v1847_v31 = vld [vmem:[%s2050_s14 + $0xf4] sm:$0xf]  ;;  %v339_v32 = vld [vmem:[%s2045_s10 + $0x8] sm:$0xff]  ;;  %v1488_v34 = vld [vmem:[%s2050_s14 + $0xf8] sm:$0xf0]  ;;  %v1559_v43 = vor.u32 %v1866_v28, %v1558_v27  ;;  %v1427_v44 = vor.u32 %v1831_v29, %v1424_v30  ;;  %p1620_p7 = scmp.ne.s32.totalorder %s1969_s24, 1 }
  0x2e   : > { %743 = vmatpush.bf16.msra.mxu0 %v1383_v5  ;;  %v1863_v35 = vld [vmem:[%s2050_s14 + $0x174] sm:$0xf]  ;;  %v1552_v36 = vld [vmem:[%s2050_s14 + $0x178] sm:$0xf0]  ;;  %v408_v37 = vunpack.c.l.b16 %v339_v32  ;;  %v409_v42 = vunpack.c.h.b16 %v339_v32  ;;  %v338_v45 = vld [vmem:[%s2045_s10] sm:$0xff]  ;;  %v1491_v46 = vor.u32 %v1847_v31, %v1488_v34 }
  0x2f   : > { %756 = vmatpush.bf16.msra.mxu1 %v1447_v6  ;;  %v1879_v40 = vld [vmem:[%s2050_s14 + $0x1f4] sm:$0xf]  ;;  %v1616_v41 = vld [vmem:[%s2050_s14 + $0x1f8] sm:$0xf0]  ;;  %v1555_v47 = vor.u32 %v1863_v35, %v1552_v36  ;;  %v1829_v48 = vld [vmem:[%s2050_s14 + $0x64] sm:$0xf]  ;;  %v406_v51 = vunpack.c.l.b16 %v338_v45  ;;  %v407_v52 = vunpack.c.h.b16 %v338_v45 }
  0x30   : > { %769 = vmatpush.bf16.msra.mxu2 %v1511_v7  ;;  %v1416_v49 = vld [vmem:[%s2050_s14 + $0x68] sm:$0xf0]  ;;  %v1845_v50 = vld [vmem:[%s2050_s14 + $0xe4] sm:$0xf]  ;;  %v1619_v53 = vor.u32 %v1879_v40, %v1616_v41  ;;  %v2133_v57 = vpack.c.b16 %v408_v37, %v408_v37  ;;  %v2137_v60 = vpack.c.b16 %v409_v42, %v409_v42  ;;  %v1827_v2 = vld [vmem:[%s2050_s14 + $0x54] sm:$0xf] }
  0x31   : > { %782 = vmatpush.bf16.msra.mxu3 %v1575_v11  ;;  %v1480_v54 = vld [vmem:[%s2050_s14 + $0xe8] sm:$0xf0]  ;;  %v1861_v55 = vld [vmem:[%s2050_s14 + $0x164] sm:$0xf]  ;;  %v2139_v61 = vpack.c.b16 %v406_v51, %v406_v51  ;;  %v1419_v62 = vor.u32 %v1829_v48, %v1416_v49  ;;  %v2141_v63 = vpack.c.b16 %v407_v52, %v407_v52  ;;  %v1408_v3 = vld [vmem:[%s2050_s14 + $0x58] sm:$0xf0] }
  0x32   : > { %744 = vmatpush.bf16.msra.mxu0 %v1375_v17  ;;  %v1544_v56 = vld [vmem:[%s2050_s14 + $0x168] sm:$0xf0]  ;;  %v1877_v58 = vld [vmem:[%s2050_s14 + $0x1e4] sm:$0xf]  ;;  %v1483_v0 = vor.u32 %v1845_v50, %v1480_v54  ;;  %v1843_v4 = vld [vmem:[%s2050_s14 + $0xd4] sm:$0xf]  ;;  %v1411_v11 = vor.u32 %v1827_v2, %v1408_v3 }
  0x33   : > { %757 = vmatpush.bf16.msra.mxu1 %v1439_v21  ;;  %v1608_v59 = vld [vmem:[%s2050_s14 + $0x1e8] sm:$0xf0]  ;;  %v1547_v1 = vor.u32 %v1861_v55, %v1544_v56  ;;  %v1472_v6 = vld [vmem:[%s2050_s14 + $0xd8] sm:$0xf0]  ;;  %v1859_v7 = vld [vmem:[%s2050_s14 + $0x154] sm:$0xf] }
  0x34   : > { %770 = vmatpush.bf16.msra.mxu2 %v1503_v22  ;;  %v1611_v5 = vor.u32 %v1877_v58, %v1608_v59  ;;  %v1536_v8 = vld [vmem:[%s2050_s14 + $0x158] sm:$0xf0]  ;;  %v1875_v9 = vld [vmem:[%s2050_s14 + $0x1d4] sm:$0xf]  ;;  %v1475_v12 = vor.u32 %v1843_v4, %v1472_v6  ;;  %v1825_v14 = vld [vmem:[%s2050_s14 + $0x44] sm:$0xf] }
  0x35   : > { %783 = vmatpush.bf16.msra.mxu3 %v1567_v26  ;;  %v1600_v10 = vld [vmem:[%s2050_s14 + $0x1d8] sm:$0xf0]  ;;  %v1539_v13 = vor.u32 %v1859_v7, %v1536_v8  ;;  %v1400_v15 = vld [vmem:[%s2050_s14 + $0x48] sm:$0xf0]  ;;  %v1841_v16 = vld [vmem:[%s2050_s14 + $0xc4] sm:$0xf] }
  0x36   : > { %745 = vmatpush.bf16.msra.mxu0 %v1367_v33  ;;  %v1603_v17 = vor.u32 %v1875_v9, %v1600_v10  ;;  %v1464_v18 = vld [vmem:[%s2050_s14 + $0xc8] sm:$0xf0]  ;;  %v1857_v19 = vld [vmem:[%s2050_s14 + $0x144] sm:$0xf]  ;;  %v1403_v23 = vor.u32 %v1825_v14, %v1400_v15  ;;  %v1823_v26 = vld [vmem:[%s2050_s14 + $0x34] sm:$0xf] }
  0x37   : > { %758 = vmatpush.bf16.msra.mxu1 %v1431_v38  ;;  %v1528_v20 = vld [vmem:[%s2050_s14 + $0x148] sm:$0xf0]  ;;  %v1873_v21 = vld [vmem:[%s2050_s14 + $0x1c4] sm:$0xf]  ;;  %v1467_v24 = vor.u32 %v1841_v16, %v1464_v18  ;;  %v1392_v27 = vld [vmem:[%s2050_s14 + $0x38] sm:$0xf0] }
  0x38   : > { %771 = vmatpush.bf16.msra.mxu2 %v1495_v39  ;;  %v1592_v22 = vld [vmem:[%s2050_s14 + $0x1c8] sm:$0xf0]  ;;  %v1531_v25 = vor.u32 %v1857_v19, %v1528_v20  ;;  %v1839_v28 = vld [vmem:[%s2050_s14 + $0xb4] sm:$0xf]  ;;  %v1456_v30 = vld [vmem:[%s2050_s14 + $0xb8] sm:$0xf0]  ;;  %v1395_v35 = vor.u32 %v1823_v26, %v1392_v27 }
  0x39   : > { %784 = vmatpush.bf16.msra.mxu3 %v1559_v43  ;;  %746 = vmatmul.bf16.vlgmr.msra.gmra.mxu0 %v2139_v61  ;;  %v1595_v29 = vor.u32 %v1873_v21, %v1592_v22  ;;  %v1855_v31 = vld [vmem:[%s2050_s14 + $0x134] sm:$0xf]  ;;  %v1520_v32 = vld [vmem:[%s2050_s14 + $0x138] sm:$0xf0]  ;;  %v1459_v36 = vor.u32 %v1839_v28, %v1456_v30  ;;  %v1821_v38 = vld [vmem:[%s2050_s14 + $0x24] sm:$0xf] }
  0x3a   : > { %790 = vmatpush.bf16.msrb.mxu0 %v1427_v44  ;;  %759 = vmatmul.bf16.vlgmr.msra.gmra.mxu1 %v2141_v63  ;;  %v1871_v33 = vld [vmem:[%s2050_s14 + $0x1b4] sm:$0xf]  ;;  %v1584_v34 = vld [vmem:[%s2050_s14 + $0x1b8] sm:$0xf0]  ;;  %v1523_v37 = vor.u32 %v1855_v31, %v1520_v32  ;;  %v1384_v39 = vld [vmem:[%s2050_s14 + $0x28] sm:$0xf0] }
  0x3b   : > { %803 = vmatpush.bf16.msrb.mxu1 %v1491_v46  ;;  %772 = vmatmul.bf16.vlgmr.msra.gmra.mxu2 %v2133_v57  ;;  %v1837_v40 = vld [vmem:[%s2050_s14 + $0xa4] sm:$0xf]  ;;  %v1587_v41 = vor.u32 %v1871_v33, %v1584_v34  ;;  %v1448_v42 = vld [vmem:[%s2050_s14 + $0xa8] sm:$0xf0]  ;;  %v1819_v50 = vld [vmem:[%s2050_s14 + $0x14] sm:$0xf] }
  0x3c   : > { %816 = vmatpush.bf16.msrb.mxu2 %v1555_v47  ;;  %785 = vmatmul.bf16.vlgmr.msra.gmra.mxu3 %v2137_v60  ;;  %v1853_v43 = vld [vmem:[%s2050_s14 + $0x124] sm:$0xf]  ;;  %v1512_v44 = vld [vmem:[%s2050_s14 + $0x128] sm:$0xf0]  ;;  %v1387_v47 = vor.u32 %v1821_v38, %v1384_v39  ;;  %v1451_v48 = vor.u32 %v1837_v40, %v1448_v42  ;;  %v1376_v51 = vld [vmem:[%s2050_s14 + $0x18] sm:$0xf0] }
  0x3d   : > { %829 = vmatpush.bf16.msrb.mxu3 %v1619_v53  ;;  %v1869_v45 = vld [vmem:[%s2050_s14 + $0x1a4] sm:$0xf]  ;;  %v1576_v46 = vld [vmem:[%s2050_s14 + $0x1a8] sm:$0xf0]  ;;  %v1515_v49 = vor.u32 %v1853_v43, %v1512_v44  ;;  %v1835_v52 = vld [vmem:[%s2050_s14 + $0x94] sm:$0xf] }
  0x3e   : > { %791 = vmatpush.bf16.msrb.mxu0 %v1419_v62  ;;  %v1579_v53 = vor.u32 %v1869_v45, %v1576_v46  ;;  %v1440_v54 = vld [vmem:[%s2050_s14 + $0x98] sm:$0xf0]  ;;  %v1851_v55 = vld [vmem:[%s2050_s14 + $0x114] sm:$0xf]  ;;  %v1379_v62 = vor.u32 %v1819_v50, %v1376_v51  ;;  %v1817_v2 = vld [vmem:[%s2050_s14 + $0x4] sm:$0xf] }
  0x3f   : > { %804 = vmatpush.bf16.msrb.mxu1 %v1483_v0  ;;  %v1504_v56 = vld [vmem:[%s2050_s14 + $0x118] sm:$0xf0]  ;;  %v1867_v58 = vld [vmem:[%s2050_s14 + $0x194] sm:$0xf]  ;;  %v1443_v0 = vor.u32 %v1835_v52, %v1440_v54  ;;  %v1368_v3 = vld [vmem:[%s2050_s14 + $0x8] sm:$0xf0] }
  0x40   : > { %817 = vmatpush.bf16.msrb.mxu2 %v1547_v1  ;;  %v1568_v59 = vld [vmem:[%s2050_s14 + $0x198] sm:$0xf0]  ;;  %v1507_v1 = vor.u32 %v1851_v55, %v1504_v56  ;;  %v1833_v4 = vld [vmem:[%s2050_s14 + $0x84] sm:$0xf]  ;;  %v1432_v6 = vld [vmem:[%s2050_s14 + $0x88] sm:$0xf0] }
  0x41   : > { %830 = vmatpush.bf16.msrb.mxu3 %v1611_v5  ;;  %v1571_v5 = vor.u32 %v1867_v58, %v1568_v59  ;;  %v1849_v7 = vld [vmem:[%s2050_s14 + $0x104] sm:$0xf]  ;;  %v1496_v8 = vld [vmem:[%s2050_s14 + $0x108] sm:$0xf0] }
  0x42   : > { %792 = vmatpush.bf16.msrb.mxu0 %v1411_v11  ;;  %v1865_v9 = vld [vmem:[%s2050_s14 + $0x184] sm:$0xf]  ;;  %v1560_v10 = vld [vmem:[%s2050_s14 + $0x188] sm:$0xf0]  ;;  %v1371_v11 = vor.u32 %v1817_v2, %v1368_v3 }
  0x43   : > { %805 = vmatpush.bf16.msrb.mxu1 %v1475_v12  ;;  %v1435_v12 = vor.u32 %v1833_v4, %v1432_v6  ;;  %v1563_v14 = vor.u32 %v1865_v9, %v1560_v10  ;;  %v336_v21 = vld [vmem:[#allocation2] sm:$0xff]  ;;  %v337_v31 = vld [vmem:[#allocation2 + $0x8] sm:$0xff] }
  0x44   : > { %818 = vmatpush.bf16.msrb.mxu2 %v1539_v13  ;;  %v1499_v13 = vor.u32 %v1849_v7, %v1496_v8 }
  0x45   : > { %831 = vmatpush.bf16.msrb.mxu3 %v1603_v17 }
  0x46   : > { %793 = vmatpush.bf16.msrb.mxu0 %v1403_v23 }
  0x47   : > { %806 = vmatpush.bf16.msrb.mxu1 %v1467_v24 }
  0x48   : > { %819 = vmatpush.bf16.msrb.mxu2 %v1531_v25 }
  0x49   : > { %832 = vmatpush.bf16.msrb.mxu3 %v1595_v29 }
  0x4a   : > { %794 = vmatpush.bf16.msrb.mxu0 %v1395_v35 }
  0x4b   : > { %807 = vmatpush.bf16.msrb.mxu1 %v1459_v36 }
  0x4c   : > { %820 = vmatpush.bf16.msrb.mxu2 %v1523_v37 }
  0x4d   : > { %833 = vmatpush.bf16.msrb.mxu3 %v1587_v41 }
  0x4e   : > { %795 = vmatpush.bf16.msrb.mxu0 %v1387_v47 }
  0x4f   : > { %808 = vmatpush.bf16.msrb.mxu1 %v1451_v48 }
  0x50   : > { %821 = vmatpush.bf16.msrb.mxu2 %v1515_v49 }
  0x51   : > { %834 = vmatpush.bf16.msrb.mxu3 %v1579_v53 }
  0x52   : > { %796 = vmatpush.bf16.msrb.mxu0 %v1379_v62 }
  0x53   : > { %809 = vmatpush.bf16.msrb.mxu1 %v1443_v0 }
  0x54   : > { %822 = vmatpush.bf16.msrb.mxu2 %v1507_v1 }
  0x55   : > { %835 = vmatpush.bf16.msrb.mxu3 %v1571_v5 }
  0x56   : > { %797 = vmatpush.bf16.msrb.mxu0 %v1371_v11 }
  0x57   : > { %810 = vmatpush.bf16.msrb.mxu1 %v1435_v12 }
  0x58   : > { %823 = vmatpush.bf16.msrb.mxu2 %v1499_v13 }
  0x59   : > { %836 = vmatpush.bf16.msrb.mxu3 %v1563_v14  ;;  %798 = vmatmul.bf16.vlgmr.msrb.gmra.mxu0 %v2139_v61 }
  0x5a   : > { %811 = vmatmul.bf16.vlgmr.msrb.gmra.mxu1 %v2141_v63 }
  0x5b   : > { %824 = vmatmul.bf16.vlgmr.msrb.gmra.mxu2 %v2133_v57 }
  0x5c   : > { %837 = vmatmul.bf16.vlgmr.msrb.gmra.mxu3 %v2137_v60 }
  0xb6   : > { %v747_v15 = vpop.f32.mrf.mxu0 }
  0xb7   : > { %v760_v16 = vpop.f32.mrf.mxu1 }
  0xb8   : > { %v761_v17 = vadd.f32 %v760_v16, %v747_v15 }
  0xbe   : > { %v773_v18 = vpop.f32.mrf.mxu2  ;;  %v749_v23 = vpop.f32.mrf.mxu0 }
  0xbf   : > { %v774_v19 = vadd.f32 %v773_v18, %v761_v17  ;;  %v786_v20 = vpop.f32.mrf.mxu3  ;;  %v762_v24 = vpop.f32.mrf.mxu1 }
  0xc1   : > { %v787_v22 = vadd.f32 %v786_v20, %v774_v19 }
  0xc3   : > { %v842_v25 = vadd.f32 %v787_v22, %v336_v21 }
  0xc5   : > { %844 = vst [vmem:[#allocation2] sm:$0xff] %v842_v25 }
  0xc6   : > { %v775_v26 = vpop.f32.mrf.mxu2 }
  0xc7   : > { %v788_v61 = vpop.f32.mrf.mxu3 }
  0xd6   : > { %v799_v27 = vpop.f32.mrf.mxu0 }
  0xd7   : > { %v812_v63 = vpop.f32.mrf.mxu1 }
  0xd8   : > { %v813_v28 = vadd.f32 %v812_v63, %v799_v27 }
  0xde   : > { %v825_v57 = vpop.f32.mrf.mxu2  ;;  %v801_v30 = vpop.f32.mrf.mxu0 }
  0xdf   : > { %v826_v29 = vadd.f32 %v825_v57, %v813_v28  ;;  %v838_v60 = vpop.f32.mrf.mxu3  ;;  %v814_v32 = vpop.f32.mrf.mxu1 }
  0xe1   : > { %v839_v33 = vadd.f32 %v838_v60, %v826_v29 }
  0xe3   : > { %v843_v34 = vadd.f32 %v839_v33, %v337_v31  ;;  %849 = sbr.rel (%p1620_p7) target bundleno = 542 (0x21e), region = 56 }
  0xe5   : > { %845 = vst [vmem:[#allocation2 + $0x8] sm:$0xff] %v843_v34 }
  0xe6   : > { %v827_v35 = vpop.f32.mrf.mxu2 }
  0xe7   : > { %v840_v36 = vpop.f32.mrf.mxu3 }
  0xe8   : > { %v1679_v37 = vld [vmem:[%s2464_s3 + $0x70] sm:$0xf]  ;;  %v1896_v38 = vld [vmem:[%s2464_s3 + $0x74] sm:$0xf0]  ;;  %v1895_v42 = vld [vmem:[%s2464_s3 + $0x74] sm:$0xf] }
  0xe9   : > { %v1743_v39 = vld [vmem:[%s2464_s3 + $0xf0] sm:$0xf]  ;;  %v1680_v40 = vor.u32 %v1896_v38, %v1679_v37  ;;  %v1912_v41 = vld [vmem:[%s2464_s3 + $0xf4] sm:$0xf0]  ;;  %v1681_v43 = vld [vmem:[%s2464_s3 + $0x78] sm:$0xf0] }
  0xea   : > { %v1744_v44 = vor.u32 %v1912_v41, %v1743_v39  ;;  %v1684_v45 = vor.u32 %v1895_v42, %v1681_v43  ;;  %v1911_v46 = vld [vmem:[%s2464_s3 + $0xf4] sm:$0xf]  ;;  %v1745_v47 = vld [vmem:[%s2464_s3 + $0xf8] sm:$0xf0]  ;;  %v1671_v48 = vld [vmem:[%s2464_s3 + $0x60] sm:$0xf] }
  0xeb   : > { %1062 = vmatpush.bf16.msra.mxu0 %v1680_v40  ;;  %v1748_v49 = vor.u32 %v1911_v46, %v1745_v47  ;;  %v1894_v50 = vld [vmem:[%s2464_s3 + $0x64] sm:$0xf0]  ;;  %v1735_v51 = vld [vmem:[%s2464_s3 + $0xe0] sm:$0xf]  ;;  %v1893_v55 = vld [vmem:[%s2464_s3 + $0x64] sm:$0xf] }
  0xec   : > { %v1910_v52 = vld [vmem:[%s2464_s3 + $0xe4] sm:$0xf0]  ;;  %1075 = vmatpush.bf16.msra.mxu1 %v1744_v44  ;;  %1088 = vmatpush.bf16.msra.mxu2 %v1684_v45  ;;  %v1672_v53 = vor.u32 %v1894_v50, %v1671_v48  ;;  %v1673_v56 = vld [vmem:[%s2464_s3 + $0x68] sm:$0xf0]  ;;  %v1909_v58 = vld [vmem:[%s2464_s3 + $0xe4] sm:$0xf] }
  0xed   : > { %v1736_v54 = vor.u32 %v1910_v52, %v1735_v51  ;;  %1101 = vmatpush.bf16.msra.mxu3 %v1748_v49  ;;  %v1676_v59 = vor.u32 %v1893_v55, %v1673_v56  ;;  %v1737_v62 = vld [vmem:[%s2464_s3 + $0xe8] sm:$0xf0]  ;;  %v1663_v0 = vld [vmem:[%s2464_s3 + $0x50] sm:$0xf]  ;;  %v1892_v1 = vld [vmem:[%s2464_s3 + $0x54] sm:$0xf0] }
  0xee   : > { %v1740_v2 = vor.u32 %v1909_v58, %v1737_v62  ;;  %v1727_v3 = vld [vmem:[%s2464_s3 + $0xd0] sm:$0xf]  ;;  %v1908_v4 = vld [vmem:[%s2464_s3 + $0xd4] sm:$0xf0]  ;;  %v1891_v5 = vld [vmem:[%s2464_s3 + $0x54] sm:$0xf]  ;;  %v1664_v6 = vor.u32 %v1892_v1, %v1663_v0 }
  0xef   : > { %1063 = vmatpush.bf16.msra.mxu0 %v1672_v53  ;;  %v1665_v7 = vld [vmem:[%s2464_s3 + $0x58] sm:$0xf0]  ;;  %v1907_v8 = vld [vmem:[%s2464_s3 + $0xd4] sm:$0xf]  ;;  %v1728_v10 = vor.u32 %v1908_v4, %v1727_v3  ;;  %v1655_v12 = vld [vmem:[%s2464_s3 + $0x40] sm:$0xf] }
  0xf0   : > { %v1729_v9 = vld [vmem:[%s2464_s3 + $0xd8] sm:$0xf0]  ;;  %1076 = vmatpush.bf16.msra.mxu1 %v1736_v54  ;;  %1089 = vmatpush.bf16.msra.mxu2 %v1676_v59  ;;  %v1668_v11 = vor.u32 %v1891_v5, %v1665_v7  ;;  %v1890_v13 = vld [vmem:[%s2464_s3 + $0x44] sm:$0xf0]  ;;  %v1719_v14 = vld [vmem:[%s2464_s3 + $0xc0] sm:$0xf] }
  0xf1   : > { %1102 = vmatpush.bf16.msra.mxu3 %v1740_v2  ;;  %v1732_v15 = vor.u32 %v1907_v8, %v1729_v9  ;;  %v1906_v16 = vld [vmem:[%s2464_s3 + $0xc4] sm:$0xf0]  ;;  %v1889_v17 = vld [vmem:[%s2464_s3 + $0x44] sm:$0xf]  ;;  %v1657_v18 = vld [vmem:[%s2464_s3 + $0x48] sm:$0xf0]  ;;  %v1656_v21 = vor.u32 %v1890_v13, %v1655_v12 }
  0xf2   : > { %v1905_v19 = vld [vmem:[%s2464_s3 + $0xc4] sm:$0xf]  ;;  %v1721_v20 = vld [vmem:[%s2464_s3 + $0xc8] sm:$0xf0]  ;;  %v1720_v22 = vor.u32 %v1906_v16, %v1719_v14  ;;  %v1660_v23 = vor.u32 %v1889_v17, %v1657_v18  ;;  %v1647_v24 = vld [vmem:[%s2464_s3 + $0x30] sm:$0xf] }
  0xf3   : > { %1064 = vmatpush.bf16.msra.mxu0 %v1664_v6  ;;  %v1888_v25 = vld [vmem:[%s2464_s3 + $0x34] sm:$0xf0]  ;;  %v1711_v26 = vld [vmem:[%s2464_s3 + $0xb0] sm:$0xf]  ;;  %v1724_v61 = vor.u32 %v1905_v19, %v1721_v20  ;;  %v1887_v63 = vld [vmem:[%s2464_s3 + $0x34] sm:$0xf] }
  0xf4   : > { %1077 = vmatpush.bf16.msra.mxu1 %v1728_v10  ;;  %1090 = vmatpush.bf16.msra.mxu2 %v1668_v11  ;;  %v1904_v27 = vld [vmem:[%s2464_s3 + $0xb4] sm:$0xf0]  ;;  %v1649_v28 = vld [vmem:[%s2464_s3 + $0x38] sm:$0xf0]  ;;  %v1903_v57 = vld [vmem:[%s2464_s3 + $0xb4] sm:$0xf]  ;;  %v1648_v60 = vor.u32 %v1888_v25, %v1647_v24 }
  0xf5   : > { %1103 = vmatpush.bf16.msra.mxu3 %v1732_v15  ;;  %v1713_v29 = vld [vmem:[%s2464_s3 + $0xb8] sm:$0xf0]  ;;  %v1712_v30 = vor.u32 %v1904_v27, %v1711_v26  ;;  %v1652_v31 = vor.u32 %v1887_v63, %v1649_v28  ;;  %v1639_v32 = vld [vmem:[%s2464_s3 + $0x20] sm:$0xf]  ;;  %v1886_v33 = vld [vmem:[%s2464_s3 + $0x24] sm:$0xf0] }
  0xf6   : > { %v1703_v34 = vld [vmem:[%s2464_s3 + $0xa0] sm:$0xf]  ;;  %v1716_v35 = vor.u32 %v1903_v57, %v1713_v29  ;;  %v1902_v36 = vld [vmem:[%s2464_s3 + $0xa4] sm:$0xf0]  ;;  %v1885_v37 = vld [vmem:[%s2464_s3 + $0x24] sm:$0xf]  ;;  %v1640_v41 = vor.u32 %v1886_v33, %v1639_v32 }
  0xf7   : > { %1065 = vmatpush.bf16.msra.mxu0 %v1656_v21  ;;  %v1641_v38 = vld [vmem:[%s2464_s3 + $0x28] sm:$0xf0]  ;;  %v1901_v39 = vld [vmem:[%s2464_s3 + $0xa4] sm:$0xf]  ;;  %v1631_v42 = vld [vmem:[%s2464_s3 + $0x10] sm:$0xf]  ;;  %v1704_v45 = vor.u32 %v1902_v36, %v1703_v34 }
  0xf8   : > { %1078 = vmatpush.bf16.msra.mxu1 %v1720_v22  ;;  %1091 = vmatpush.bf16.msra.mxu2 %v1660_v23  ;;  %v1705_v40 = vld [vmem:[%s2464_s3 + $0xa8] sm:$0xf0]  ;;  %v1884_v43 = vld [vmem:[%s2464_s3 + $0x14] sm:$0xf0]  ;;  %v1695_v44 = vld [vmem:[%s2464_s3 + $0x90] sm:$0xf]  ;;  %v1644_v46 = vor.u32 %v1885_v37, %v1641_v38 }
  0xf9   : > { %1104 = vmatpush.bf16.msra.mxu3 %v1724_v61  ;;  %v1900_v47 = vld [vmem:[%s2464_s3 + $0x94] sm:$0xf0]  ;;  %v1883_v48 = vld [vmem:[%s2464_s3 + $0x14] sm:$0xf]  ;;  %v1633_v49 = vld [vmem:[%s2464_s3 + $0x18] sm:$0xf0]  ;;  %v1708_v50 = vor.u32 %v1901_v39, %v1705_v40  ;;  %v1632_v59 = vor.u32 %v1884_v43, %v1631_v42 }
  0xfa   : > { %v1899_v51 = vld [vmem:[%s2464_s3 + $0x94] sm:$0xf]  ;;  %v850_v52 = vld [vmem:[#allocation2] sm:$0xff]  ;;  %v1697_v54 = vld [vmem:[%s2464_s3 + $0x98] sm:$0xf0]  ;;  %v1696_v62 = vor.u32 %v1900_v47, %v1695_v44  ;;  %v1636_v1 = vor.u32 %v1883_v48, %v1633_v49 }
  0xfb   : > { %1066 = vmatpush.bf16.msra.mxu0 %v1648_v60  ;;  %v852_v53 = vld [vmem:[%s2463_s2] sm:$0x3]  ;;  %v851_v56 = vld [vmem:[#allocation2 + $0x8] sm:$0xff]  ;;  %v1700_v7 = vor.u32 %v1899_v51, %v1697_v54  ;;  %v1881_v8 = vld [vmem:[%s2464_s3 + $0x4] sm:$0xf] }
  0xfc   : > { %1079 = vmatpush.bf16.msra.mxu1 %v1712_v30  ;;  %1092 = vmatpush.bf16.msra.mxu2 %v1652_v31  ;;  %v854_v55 = vperm.slane %v852_v53, 0  ;;  %v855_v58 = vperm.slane %v852_v53, 1  ;;  %v1623_v0 = vld [vmem:[%s2464_s3] sm:$0xf]  ;;  %v1882_v2 = vld [vmem:[%s2464_s3 + $0x4] sm:$0xf0] }
  0xfd   : > { %1105 = vmatpush.bf16.msra.mxu3 %v1716_v35  ;;  %v1687_v3 = vld [vmem:[%s2464_s3 + $0x80] sm:$0xf]  ;;  %v1898_v4 = vld [vmem:[%s2464_s3 + $0x84] sm:$0xf0]  ;;  %v1625_v9 = vld [vmem:[%s2464_s3 + $0x8] sm:$0xf0]  ;;  %v1624_v13 = vor.u32 %v1882_v2, %v1623_v0 }
  0xfe   : > { %v858_v5 = vadd.f32 %v854_v55, %v850_v52  ;;  %v859_v6 = vadd.f32 %v855_v58, %v851_v56  ;;  %v1897_v10 = vld [vmem:[%s2464_s3 + $0x84] sm:$0xf]  ;;  %v1689_v11 = vld [vmem:[%s2464_s3 + $0x88] sm:$0xf0]  ;;  %v1688_v15 = vor.u32 %v1898_v4, %v1687_v3  ;;  %v1628_v16 = vor.u32 %v1881_v8, %v1625_v9  ;;  %v1920_v18 = vld [vmem:[%s2466_s5 + $0x38] sm:$0xff] }
  0xff   : > { %1067 = vmatpush.bf16.msra.mxu0 %v1640_v41  ;;  %v1692_v17 = vor.u32 %v1897_v10, %v1689_v11  ;;  %v1928_v20 = vld [vmem:[%s2466_s5 + $0x78] sm:$0xff]  ;;  %v1919_v22 = vld [vmem:[%s2466_s5 + $0x30] sm:$0xff]  ;;  %v1918_v24 = vld [vmem:[%s2466_s5 + $0x28] sm:$0xff] }
 0x100   : > { %1080 = vmatpush.bf16.msra.mxu1 %v1704_v45  ;;  %1093 = vmatpush.bf16.msra.mxu2 %v1644_v46  ;;  %v860_v12 = vmax.f32 %v858_v5, 0.0  ;;  %v861_v14 = vmax.f32 %v859_v6, 0.0  ;;  %v1927_v23 = vld [vmem:[%s2466_s5 + $0x70] sm:$0xff]  ;;  %v1926_v25 = vld [vmem:[%s2466_s5 + $0x68] sm:$0xff]  ;;  %v1917_v26 = vld [vmem:[%s2466_s5 + $0x20] sm:$0xff] }
 0x101   : > { %1106 = vmatpush.bf16.msra.mxu3 %v1708_v50  ;;  %v1925_v61 = vld [vmem:[%s2466_s5 + $0x60] sm:$0xff]  ;;  %v1916_v27 = vld [vmem:[%s2466_s5 + $0x18] sm:$0xff]  ;;  %v1915_v63 = vld [vmem:[%s2466_s5 + $0x10] sm:$0xff] }
 0x102   : > { %v862_v19 = vpack.c.bf16 %v860_v12, %v860_v12  ;;  %v863_v21 = vpack.c.bf16 %v861_v14, %v861_v14  ;;  %v1924_v28 = vld [vmem:[%s2466_s5 + $0x58] sm:$0xff]  ;;  %v1914_v57 = vld [vmem:[%s2466_s5 + $0x8] sm:$0xff]  ;;  %v1923_v29 = vld [vmem:[%s2466_s5 + $0x50] sm:$0xff] }
 0x103   : > { %1068 = vmatpush.bf16.msra.mxu0 %v1632_v59  ;;  %v1913_v60 = vld [vmem:[%s2466_s5] sm:$0xff]  ;;  %v1922_v30 = vld [vmem:[%s2466_s5 + $0x48] sm:$0xff] }
 0x104   : > { %1081 = vmatpush.bf16.msra.mxu1 %v1696_v62  ;;  %1094 = vmatpush.bf16.msra.mxu2 %v1636_v1  ;;  %v1921_v31 = vld [vmem:[%s2466_s5 + $0x40] sm:$0xff] }
 0x105   : > { %1107 = vmatpush.bf16.msra.mxu3 %v1700_v7  ;;  %v896_v32 = vld [vmem:[%s2465_s4] sm:$0x3] }
 0x106   : > { %v898_v33 = vperm.slane %v896_v32, 0  ;;  %v899_v38 = vperm.slane %v896_v32, 1  ;;  %v1954_v51 = vld [vmem:[%s2467_s6] ss:$0 sm:$0xff] }
 0x107   : > { %1069 = vmatpush.bf16.msra.mxu0 %v1624_v13 }
 0x108   : > { %1082 = vmatpush.bf16.msra.mxu1 %v1688_v15  ;;  %1095 = vmatpush.bf16.msra.mxu2 %v1628_v16 }
 0x109   : > { %1108 = vmatpush.bf16.msra.mxu3 %v1692_v17 }
 0x10a   : > { %1070 = vmatmul.bf16.vlgmr.msra.gmra.mxu0 %v862_v19 }
 0x10b   : > { %1250 = vmatpush.bf16.msrb.mxu0 %v1920_v18  ;;  %1083 = vmatmul.bf16.vlgmr.msra.gmra.mxu1 %v863_v21 }
 0x10c   : > { %1263 = vmatpush.bf16.msrb.mxu1 %v1928_v20  ;;  %1096 = vmatmul.bf16.vlgmr.msra.gmra.mxu2 %v862_v19 }
 0x10d   : > { %1109 = vmatmul.bf16.vlgmr.msra.gmra.mxu3 %v863_v21 }
 0x10f   : > { %1251 = vmatpush.bf16.msrb.mxu0 %v1919_v22 }
 0x110   : > { %1264 = vmatpush.bf16.msrb.mxu1 %v1927_v23 }
 0x113   : > { %1252 = vmatpush.bf16.msrb.mxu0 %v1918_v24 }
 0x114   : > { %1265 = vmatpush.bf16.msrb.mxu1 %v1926_v25 }
 0x117   : > { %1253 = vmatpush.bf16.msrb.mxu0 %v1917_v26 }
 0x118   : > { %1266 = vmatpush.bf16.msrb.mxu1 %v1925_v61 }
 0x11b   : > { %1254 = vmatpush.bf16.msrb.mxu0 %v1916_v27 }
 0x11c   : > { %1267 = vmatpush.bf16.msrb.mxu1 %v1924_v28 }
 0x11f   : > { %1255 = vmatpush.bf16.msrb.mxu0 %v1915_v63 }
 0x120   : > { %1268 = vmatpush.bf16.msrb.mxu1 %v1923_v29 }
 0x123   : > { %1256 = vmatpush.bf16.msrb.mxu0 %v1914_v57 }
 0x124   : > { %1269 = vmatpush.bf16.msrb.mxu1 %v1922_v30 }
 0x127   : > { %1257 = vmatpush.bf16.msrb.mxu0 %v1913_v60 }
 0x128   : > { %1270 = vmatpush.bf16.msrb.mxu1 %v1921_v31 }
 0x187   : > { %v1071_v34 = vpop.f32.mrf.mxu0 }
 0x188   : > { %v1072_v35 = vadd.f32 %v1071_v34, %v898_v33  ;;  %v1084_v36 = vpop.f32.mrf.mxu1 }
 0x18a   : > { %v1085_v37 = vadd.f32 %v1084_v36, %v1072_v35 }
 0x18c   : > { %v1114_v39 = vmax.f32 %v1085_v37, 0.0 }
 0x18e   : > { %v1116_v40 = vpack.c.bf16 %v1114_v39, %v1114_v39 }
 0x18f   : > { %v1097_v41 = vpop.f32.mrf.mxu2  ;;  %v1073_v44 = vpop.f32.mrf.mxu0 }
 0x190   : > { %v1098_v42 = vadd.f32 %v1097_v41, %v899_v38  ;;  %v1110_v43 = vpop.f32.mrf.mxu3  ;;  %v1086_v45 = vpop.f32.mrf.mxu1  ;;  %1258 = vmatmul.bf16.vlgmr.msrb.gmra.mxu0 %v1116_v40 }
 0x192   : > { %v1111_v46 = vadd.f32 %v1110_v43, %v1098_v42 }
 0x194   : > { %v1115_v47 = vmax.f32 %v1111_v46, 0.0 }
 0x196   : > { %v1117_v48 = vpack.c.bf16 %v1115_v47, %v1115_v47 }
 0x197   : > { %v1099_v49 = vpop.f32.mrf.mxu2 }
 0x198   : > { %v1112_v50 = vpop.f32.mrf.mxu3  ;;  %1271 = vmatmul.bf16.vlgmr.msrb.gmra.mxu1 %v1117_v48 }
 0x20d   : > { %v1259_v52 = vpop.f32.mrf.mxu0 }
 0x20e   : > { %v1260_v53 = vadd.f32 %v1954_v51, %v1259_v52 }
 0x215   : > { %v1272_v54 = vpop.f32.mrf.mxu1  ;;  %v1261_v56 = vpop.f32.mrf.mxu0 }
 0x216   : > { %v1273_v55 = vadd.f32 %v1272_v54, %v1260_v53 }
 0x218   : > { %1276 = vst [vmem:[%s2468_s7] sm:$0xff] %v1273_v55 }
 0x21d   : > { %v1274_v58 = vpop.f32.mrf.mxu1 }
 0x21e PF: > { %s17_s26 = sadd.s32 1, %s1977_s26   ;;  %s2469_s24 = smov %s1973_s25 }
 0x21f   : > { %p14_p8 = scmp.ge.s32.totalorder %s17_s26, 4   ;;  %s2470_s25 = smov %s2472_s27 }
 0x221   :  { %16 = sbr.rel (!%p14_p8) target bundleno = 2 (0x2), region = 89 }

</bundles_post_ra>
